<compile_context>
chip_gen: v6e
topology: v6e:2x2x1
jax: 0.10.0
libtpu: 0.0.40
codegen_flags: <defaults>
</compile_context>

<pallas_src>
import functools

import jax
import jax.numpy as jnp
from jax.experimental import pallas as pl
from jax.experimental.pallas import tpu as pltpu

_LANE = 128


def _fermi_dirac_kernel(dist_ref, out_ref, *, r, t):
    # probs = 1 / (exp((x - r)/t) + 1) = sigmoid((r - x)/t)
    #       = 0.5 * tanh((r - x) / (2t)) + 0.5
    # Single EUP transcendental + a couple of VPU ops; numerically stable.
    x = dist_ref[...].astype(jnp.float32)
    z = (x - r) * (-0.5 / t)
    out_ref[...] = (0.5 * jnp.tanh(z) + 0.5).astype(out_ref.dtype)


def fermi_dirac_decoder(dist, r: float, t: float, *, lane_cols: int = 1024,
                        target_block_rows: int = 1024):
    """Apply the Fermi-Dirac decoder elementwise to `dist` (any shape)."""
    orig_shape = dist.shape
    total = dist.size
    if total == 0:
        return dist

    flat = dist.reshape(-1)

    # Lane-dense 2-D layout: width N is a multiple of 128 so output stores are
    # unmasked full-lane vst's regardless of the original trailing dim.
    if total >= lane_cols:
        N = lane_cols
    else:
        N = max(_LANE, pl.cdiv(total, _LANE) * _LANE)
    padded = pl.cdiv(total, N) * N
    if padded != total:
        flat = jnp.pad(flat, (0, padded - total))
    M = padded // N
    arr2d = flat.reshape(M, N)

    # Row tile: full extent when the array is small, otherwise a big tile
    # (multiple of 8 rows).  For very large inputs shrink the tile so the grid
    # keeps >= 8 steps, letting the two v7x TensorCores share the work.
    if M <= target_block_rows:
        tm = M
    else:
        tm = target_block_rows
        while tm > 8 and pl.cdiv(M, tm) < 8:
            tm //= 2

    itemsize = jnp.dtype(dist.dtype).itemsize
    tile_bytes = tm * N * itemsize
    # in + out tiles, double-buffered, plus headroom; cap for v7x's 64 MiB VMEM.
    vmem_limit = int(min(48 * 1024 * 1024, max(16 * 1024 * 1024, 6 * tile_bytes)))

    kernel = functools.partial(_fermi_dirac_kernel, r=float(r), t=float(t))

    out2d = pl.pallas_call(
        kernel,
        out_shape=jax.ShapeDtypeStruct((M, N), dist.dtype),
        grid=(pl.cdiv(M, tm),),
        in_specs=[pl.BlockSpec((tm, N), lambda i: (i, 0))],
        out_specs=pl.BlockSpec((tm, N), lambda i: (i, 0)),
        compiler_params=pltpu.CompilerParams(
            dimension_semantics=("parallel",),
            vmem_limit_bytes=vmem_limit,
        ),
    )(arr2d)

    return out2d.reshape(-1)[:total].reshape(orig_shape)


if __name__ == "__main__":
    # Deterministic "parameters" of the decoder (module __init__ args).
    r = 2.0
    t = 1.0

    key = jax.random.PRNGKey(0)
    # Small distance-matrix-like input.
    dist = jax.random.uniform(key, (8, 128), dtype=jnp.float32) * 5.0

    probs = fermi_dirac_decoder(dist, r, t)
    probs = jax.block_until_ready(probs)

    # Reference check in plain JAX (same formula as the PyTorch module).
    ref = 1.0 / (jnp.exp((dist - r) / t) + 1.0)
    assert jnp.allclose(probs, ref, atol=1e-5, rtol=1e-5), "mismatch vs reference"

    print("KERNEL_OK")
</pallas_src>

<mosaic_0001>
module attributes {stable_mosaic.version = 11 : i64} {
  func.func @_fermi_dirac_kernel(%arg0: i32, %arg1: memref<1x1024xf32, #tpu.memory_space<vmem>>, %arg2: memref<1x1024xf32, #tpu.memory_space<vmem>>) attributes {dimension_semantics = [#tpu.dimension_semantics<parallel>], iteration_bounds = array<i64: 1>, scalar_prefetch = 0 : i64, scratch_operands = 0 : i64, tpu.core_type = #tpu.core_type<tc>, window_params = [{transform_indices = @transform_0, window_bounds = array<i64: 1, 1024>}, {transform_indices = @transform_1, window_bounds = array<i64: 1, 1024>}]} {
    %c0 = arith.constant 0 : index
    %c0_0 = arith.constant 0 : index
    %0 = vector.load %arg1[%c0, %c0_0] : memref<1x1024xf32, #tpu.memory_space<vmem>>, vector<1x1024xf32>
    %cst = arith.constant 2.000000e+00 : f32
    %1 = vector.broadcast %cst : f32 to vector<1x1024xf32>
    %2 = arith.subf %0, %1 : vector<1x1024xf32>
    %cst_1 = arith.constant -5.000000e-01 : f32
    %3 = vector.broadcast %cst_1 : f32 to vector<1x1024xf32>
    %4 = arith.mulf %2, %3 : vector<1x1024xf32>
    %5 = math.tanh %4 : vector<1x1024xf32>
    %cst_2 = arith.constant 5.000000e-01 : f32
    %6 = vector.broadcast %cst_2 : f32 to vector<1x1024xf32>
    %7 = arith.mulf %6, %5 : vector<1x1024xf32>
    %cst_3 = arith.constant 5.000000e-01 : f32
    %8 = vector.broadcast %cst_3 : f32 to vector<1x1024xf32>
    %9 = arith.addf %7, %8 : vector<1x1024xf32>
    %c0_4 = arith.constant 0 : index
    %c0_5 = arith.constant 0 : index
    %10 = vector.load %arg2[%c0_4, %c0_5] : memref<1x1024xf32, #tpu.memory_space<vmem>>, vector<1x1024xf32>
    tpu.vector_store %arg2[%c0_4, %c0_5], %9 {strides = array<i32>} : memref<1x1024xf32, #tpu.memory_space<vmem>>, vector<1x1024xf32>,
    return
  }
  func.func @transform_0(%arg0: i32) -> (i32, i32) {
    %c0_i32 = arith.constant 0 : i32
    %c0_i32_0 = arith.constant 0 : i32
    return %arg0, %c0_i32 : i32, i32
  }
  func.func @transform_1(%arg0: i32) -> (i32, i32) {
    %c0_i32 = arith.constant 0 : i32
    %c0_i32_0 = arith.constant 0 : i32
    return %arg0, %c0_i32 : i32, i32
  }
}

</mosaic_0001>

<bundles_post_ra>
// kernel: tpu_custom_call.1
= control target key start
LH: loop header
LB: loop body
LE: loop exit
PB: predicated region body
PF: predicated region fallthrough
CT: control target
= control target key end

     0   :  { %6 = vsyncpa [#allocation3], 0  ;;  %s110_s0 = inlined_call_operand.hbm [shape: f32[1,1024], index: 0, kind: input, shape index: {}]   ;;  %s111_s1 = inlined_call_operand.hbm [shape: f32[1,1024], index: 1, kind: output, shape index: {}]  }
   0x1   :  { %7 = vsyncpa [#allocation4], 0  ;;  %s92_s6 = smov [#allocation2]  }
   0x2   :  { %s14_s7 = sshll.u32 %s92_s6, 4  ;;  %s15_s7 = int_to_ptr.vmem [resolvable:$true] %s14_s7 }
   0x3   :  { %s56_s8 = scalar_lea.vmem %s15_s7, 128  ;;  %p61_p1 = scmp.lt.s32.totalorder %s15_s7, %s15_s7 }
   0x4   :  { %p57_p0 = scmp.ne.s32.totalorder %s15_s7, %s56_s8  ;;  %p62_p2 = scmp.lt.s32.totalorder %s56_s8, %s56_s8 }
   0x6   :  { %p63_p3 = por %p62_p2, %p61_p1 }
   0x8   :  { %p64_p4 = pnand %p63_p3, %p57_p0 }
   0xa   :  { %67 = shalt.err (!%p64_p4)
}
   0xb   :  { %17 = dma.hbm_to_vmem [thread:$0]  %s110_s0, 128, %s15_s7, [#allocation3]  }
   0xc   :  { %88 = dma.done.wait [#allocation3], 128  }
   0xd   :  { %89 = vsyncadd [#allocation3], 4294967168  ;;  %v21_v0 = vld [vmem:[#allocation2] sm:$0xff]  ;;  %s93_s11 = smov [#allocation5]  }
   0xe   :  { %v43_v1 = vadd.f32 -2.0, %v21_v0  ;;  %s34_s12 = sshll.u32 %s93_s11, 4  ;;  %s35_s12 = int_to_ptr.vmem [resolvable:$true] %s34_s12 }
   0xf   :  { %s68_s13 = scalar_lea.vmem %s35_s12, 128  ;;  %p73_p6 = scmp.lt.s32.totalorder %s35_s12, %s35_s12 }
  0x10   :  { %v23_v2 = vmul.f32 -0.5, %v43_v1  ;;  %p69_p5 = scmp.ne.s32.totalorder %s35_s12, %s68_s13  ;;  %p74_p7 = scmp.lt.s32.totalorder %s68_s13, %s68_s13 }
  0x12   :  { %46 = vtanh.f32 %v23_v2  ;;  %p75_p8 = por %p74_p7, %p73_p6 }
  0x14   :  { %p76_p9 = pnand %p75_p8, %p69_p5 }
  0x1f   :  { %v47_v3 = vpop.eup %46 }
  0x20   :  { %v25_v4 = vmul.f32 0.5, %v47_v3 }
  0x22   :  { %v26_v5 = vadd.f32 0.5, %v25_v4 }
  0x24   :  { %27 = vst [vmem:[#allocation5] sm:$0xff] %v26_v5 }
  0x25   :  { %79 = shalt.err (!%p76_p9)
}
  0x26   :  { %37 = dma.vmem_to_hbm [thread:$0]  %s35_s12, 128, %s111_s1, [#allocation4]  }
  0x27   :  { %90 = dma.done.wait [#allocation4], 128  }
  0x28   :  { %91 = vsyncadd [#allocation4], 4294967168 }
  0x29   :  { %41 = vsyncpa [#allocation3], 1 }
  0x2a   :  { %42 = vsyncpa [#allocation4], 1 }

</bundles_post_ra>
